<compile_context>
chip_gen: v5e
topology: v5e:2x2
jax: 0.10.0
libtpu: 0.0.40
codegen_flags: <defaults>
</compile_context>

<pallas_src>
import jax
import jax.numpy as jnp
from jax.experimental import pallas as pl
from jax.experimental.pallas import tpu as pltpu

D_IN = 28 * 28          # 784 — kept unpadded in HBM
D_HID = 64
D_OUT = 10
D_OUT_PAD = 128         # lane-dense output width


def _round_up(n, m):
    return ((n + m - 1) // m) * m


def resnet_mlp_kernel(x_ref, w1_ref, b1_ref, w2_ref, b2_ref, w3_ref, b3_ref,
                      o_ref):
    """Fused MLP-with-residual forward for one batch tile.

    x_ref:  (TILE_B, 784) bf16
    w*_ref: bf16 weights (in, out); w3 lane-padded to 128 output cols
    b*_ref: f32 biases (1, out); b3 lane-padded to 128
    o_ref:  (TILE_B, 128) bf16 logits (cols 10..127 are b3 padding)
    """
    x = x_ref[...]                                               # bf16

    # h1 = relu(x @ W1 + b1)  -- MXU bf16, f32 accumulate; VPU ops in f32.
    h1 = jnp.dot(x, w1_ref[...], preferred_element_type=jnp.float32)
    h1 = jnp.maximum(h1 + b1_ref[...], 0.0)                      # (TILE_B, 64) f32

    # h2 = relu(h1 @ W2 + b2)
    h2 = jnp.dot(h1.astype(jnp.bfloat16), w2_ref[...],
                 preferred_element_type=jnp.float32)
    h2 = jnp.maximum(h2 + b2_ref[...], 0.0)                      # (TILE_B, 64) f32

    # residual + dropout (eval mode => identity)
    do = h2 + h1                                                 # (TILE_B, 64) f32

    # logits = do @ W3 + b3  -- lane-dense 128-wide, bf16 writeback.
    logits = jnp.dot(do.astype(jnp.bfloat16), w3_ref[...],
                     preferred_element_type=jnp.float32)
    o_ref[...] = (logits + b3_ref[...]).astype(o_ref.dtype)      # (TILE_B, 128) bf16


def prepare_params(params):
    """One-time weight cast / lane-pad (hoist OUT of the per-call hot path)."""
    w1 = params["w1"].astype(jnp.bfloat16)                       # (784, 64)
    b1 = params["b1"].astype(jnp.float32).reshape(1, D_HID)
    w2 = params["w2"].astype(jnp.bfloat16)                       # (64, 64)
    b2 = params["b2"].astype(jnp.float32).reshape(1, D_HID)
    w3 = jnp.zeros((D_HID, D_OUT_PAD), jnp.bfloat16)
    w3 = w3.at[:, :D_OUT].set(params["w3"].astype(jnp.bfloat16))
    b3 = jnp.zeros((1, D_OUT_PAD), jnp.float32)
    b3 = b3.at[:, :D_OUT].set(params["b3"].astype(jnp.float32))
    return (w1, b1, w2, b2, w3, b3)


def _pick_tile_b(B, tile_b):
    # Clamp so tiny batches don't pad to a full tile; keep a multiple of 16
    # so bf16 rows pack sublane groups densely.
    tile_b = min(tile_b, _round_up(B, 16))
    tile_b = _round_up(tile_b, 16)
    # Split a large single-tile batch into >=2 grid steps so the "parallel"
    # batch axis can feed both TensorCores on megacore parts (v7x).
    if B >= 512 and _round_up(B, tile_b) // tile_b < 2:
        tile_b = _round_up(pl.cdiv(B, 2), 16)
    return tile_b


def resnet_forward_padded(x_bf16, prepared, *, tile_b=1024):
    """Hot path.  x_bf16: (B, 784) bf16 (pre-cast, unpadded).

    Returns (B_pad, 128) bf16 logits; columns 10..127 and rows B..B_pad are
    padding — slice lazily at the consumer (e.g. inside the loss).
    """
    B = x_bf16.shape[0]
    tile_b = _pick_tile_b(B, tile_b)
    B_pad = _round_up(B, tile_b)
    if B_pad != B:
        x_bf16 = jnp.pad(x_bf16, ((0, B_pad - B), (0, 0)))

    w1, b1, w2, b2, w3, b3 = prepared
    grid = (B_pad // tile_b,)

    return pl.pallas_call(
        resnet_mlp_kernel,
        out_shape=jax.ShapeDtypeStruct((B_pad, D_OUT_PAD), jnp.bfloat16),
        grid=grid,
        in_specs=[
            # Batch-tiled activation stream.  Last block dim == full array dim
            # (784): legal, and no K-padding bytes ever cross HBM.
            pl.BlockSpec((tile_b, D_IN), lambda i: (i, 0)),
            # Weights / biases: constant index_map -> VMEM-resident across steps.
            pl.BlockSpec((D_IN, D_HID), lambda i: (0, 0)),
            pl.BlockSpec((1, D_HID), lambda i: (0, 0)),
            pl.BlockSpec((D_HID, D_HID), lambda i: (0, 0)),
            pl.BlockSpec((1, D_HID), lambda i: (0, 0)),
            pl.BlockSpec((D_HID, D_OUT_PAD), lambda i: (0, 0)),
            pl.BlockSpec((1, D_OUT_PAD), lambda i: (0, 0)),
        ],
        out_specs=pl.BlockSpec((tile_b, D_OUT_PAD), lambda i: (i, 0)),
        compiler_params=pltpu.CompilerParams(
            dimension_semantics=("parallel",)),
    )(x_bf16, w1, b1, w2, b2, w3, b3)


def resnet_forward(x, params, *, tile_b=1024):
    """Convenience wrapper: f32 x + f32 params in, (B, 10) f32 logits out.

    For training/inference loops, call prepare_params() once and feed
    pre-cast bf16 x to resnet_forward_padded directly (keeps the per-call
    pad/cast/slice traffic out of the hot path).
    """
    B = x.shape[0]
    out = resnet_forward_padded(x.astype(jnp.bfloat16), prepare_params(params),
                                tile_b=tile_b)
    return out[:B, :D_OUT].astype(jnp.float32)


def init_params(key):
    """Deterministic synthetic parameters with the module's shapes."""
    k1, k2, k3, k4, k5, k6 = jax.random.split(key, 6)
    # nn.Linear(784, 64), nn.Linear(64, 64), nn.Linear(64, 10)
    # stored as (in, out); biases kept 2D (1, out).
    return {
        "w1": jax.random.normal(k1, (D_IN, D_HID), jnp.float32) * 0.02,
        "b1": jax.random.normal(k2, (1, D_HID), jnp.float32) * 0.02,
        "w2": jax.random.normal(k3, (D_HID, D_HID), jnp.float32) * 0.02,
        "b2": jax.random.normal(k4, (1, D_HID), jnp.float32) * 0.02,
        "w3": jax.random.normal(k5, (D_HID, D_OUT), jnp.float32) * 0.02,
        "b3": jax.random.normal(k6, (1, D_OUT), jnp.float32) * 0.02,
    }


def resnet_forward_ref(x_bf16, params):
    """Pure-JAX reference with matching bf16-matmul / f32-accumulate precision."""
    h1 = jnp.dot(x_bf16, params["w1"].astype(jnp.bfloat16),
                 preferred_element_type=jnp.float32) + params["b1"].reshape(1, -1)
    h1 = jax.nn.relu(h1)
    h2 = jnp.dot(h1.astype(jnp.bfloat16), params["w2"].astype(jnp.bfloat16),
                 preferred_element_type=jnp.float32) + params["b2"].reshape(1, -1)
    h2 = jax.nn.relu(h2)
    do = h2 + h1
    return jnp.dot(do.astype(jnp.bfloat16), params["w3"].astype(jnp.bfloat16),
                   preferred_element_type=jnp.float32) + params["b3"].reshape(1, -1)


if __name__ == "__main__":
    key = jax.random.PRNGKey(0)
    kx, kp = jax.random.split(key)

    # Small shapes; tile_b=16 exercises the multi-step batch grid
    # (B=40 -> padded to 48 -> grid of 3 tiles).  Production default is
    # tile_b=1024 with bigger batches.
    B = 40
    x = jax.random.normal(kx, (B, D_IN), jnp.float32)
    params = init_params(kp)

    x_bf = x.astype(jnp.bfloat16)            # pre-cast once (hot-path contract)
    prepared = prepare_params(params)        # one-time weight cast / pad

    out_padded = resnet_forward_padded(x_bf, prepared, tile_b=16)
    out_padded = jax.block_until_ready(out_padded)
    logits = out_padded[:B, :D_OUT].astype(jnp.float32)

    ref = resnet_forward_ref(x_bf, params)
    assert logits.shape == (B, D_OUT), logits.shape
    max_diff = jnp.max(jnp.abs(logits - ref))
    assert jnp.allclose(logits, ref, atol=2e-2, rtol=2e-2), (
        f"Pallas output mismatch vs JAX reference: max |diff| = {max_diff}")

    # Also exercise the convenience wrapper (default tile, single-step grid).
    logits2 = jax.block_until_ready(resnet_forward(x, params))
    assert logits2.shape == (B, D_OUT)
    assert jnp.allclose(logits2, ref, atol=2e-2, rtol=2e-2)

    print("KERNEL_OK")
</pallas_src>

<mosaic_0001>
module attributes {stable_mosaic.version = 11 : i64} {
  func.func @resnet_mlp_kernel(%arg0: i32, %arg1: memref<16x784xbf16, #tpu.memory_space<vmem>>, %arg2: memref<784x64xbf16, #tpu.memory_space<vmem>>, %arg3: memref<1x64xf32, #tpu.memory_space<vmem>>, %arg4: memref<64x64xbf16, #tpu.memory_space<vmem>>, %arg5: memref<1x64xf32, #tpu.memory_space<vmem>>, %arg6: memref<64x128xbf16, #tpu.memory_space<vmem>>, %arg7: memref<1x128xf32, #tpu.memory_space<vmem>>, %arg8: memref<16x128xbf16, #tpu.memory_space<vmem>>) attributes {dimension_semantics = [#tpu.dimension_semantics<parallel>], iteration_bounds = array<i64: 3>, scalar_prefetch = 0 : i64, scratch_operands = 0 : i64, tpu.core_type = #tpu.core_type<tc>, window_params = [{transform_indices = @transform_0, window_bounds = array<i64: 16, 784>}, {pipeline_mode = #tpu.pipeline_mode<synchronous>, transform_indices = @transform_1, window_bounds = array<i64: 784, 64>}, {pipeline_mode = #tpu.pipeline_mode<synchronous>, transform_indices = @transform_2, window_bounds = array<i64: 1, 64>}, {pipeline_mode = #tpu.pipeline_mode<synchronous>, transform_indices = @transform_3, window_bounds = array<i64: 64, 64>}, {pipeline_mode = #tpu.pipeline_mode<synchronous>, transform_indices = @transform_4, window_bounds = array<i64: 1, 64>}, {pipeline_mode = #tpu.pipeline_mode<synchronous>, transform_indices = @transform_5, window_bounds = array<i64: 64, 128>}, {pipeline_mode = #tpu.pipeline_mode<synchronous>, transform_indices = @transform_6, window_bounds = array<i64: 1, 128>}, {transform_indices = @transform_7, window_bounds = array<i64: 16, 128>}]} {
    %c0 = arith.constant 0 : index
    %c0_0 = arith.constant 0 : index
    %0 = vector.load %arg1[%c0, %c0_0] : memref<16x784xbf16, #tpu.memory_space<vmem>>, vector<16x784xbf16>
    %c0_1 = arith.constant 0 : index
    %c0_2 = arith.constant 0 : index
    %1 = vector.load %arg2[%c0_1, %c0_2] : memref<784x64xbf16, #tpu.memory_space<vmem>>, vector<784x64xbf16>
    %cst = arith.constant dense<0.000000e+00> : vector<16x64xf32>
    %2 = tpu.matmul %0, %1, %cst {dimension_numbers = #tpu.dot_dimension_numbers<[1], [0], [0], [1], [0, 0, 1, 1], [], []>} : vector<16x784xbf16>, vector<784x64xbf16>, vector<16x64xf32> -> vector<16x64xf32>
    %c0_3 = arith.constant 0 : index
    %c0_4 = arith.constant 0 : index
    %3 = vector.load %arg3[%c0_3, %c0_4] : memref<1x64xf32, #tpu.memory_space<vmem>>, vector<1x64xf32>
    %4 = vector.broadcast %3 : vector<1x64xf32> to vector<16x64xf32>
    %5 = arith.addf %2, %4 : vector<16x64xf32>
    %cst_5 = arith.constant 0.000000e+00 : f32
    %6 = vector.broadcast %cst_5 : f32 to vector<16x64xf32>
    %7 = arith.maximumf %5, %6 : vector<16x64xf32>
    %8 = arith.truncf %7 : vector<16x64xf32> to vector<16x64xbf16>
    %c0_6 = arith.constant 0 : index
    %c0_7 = arith.constant 0 : index
    %9 = vector.load %arg4[%c0_6, %c0_7] : memref<64x64xbf16, #tpu.memory_space<vmem>>, vector<64x64xbf16>
    %cst_8 = arith.constant dense<0.000000e+00> : vector<16x64xf32>
    %10 = tpu.matmul %8, %9, %cst_8 {dimension_numbers = #tpu.dot_dimension_numbers<[1], [0], [0], [1], [0, 0, 1, 1], [], []>} : vector<16x64xbf16>, vector<64x64xbf16>, vector<16x64xf32> -> vector<16x64xf32>
    %c0_9 = arith.constant 0 : index
    %c0_10 = arith.constant 0 : index
    %11 = vector.load %arg5[%c0_9, %c0_10] : memref<1x64xf32, #tpu.memory_space<vmem>>, vector<1x64xf32>
    %12 = vector.broadcast %11 : vector<1x64xf32> to vector<16x64xf32>
    %13 = arith.addf %10, %12 : vector<16x64xf32>
    %cst_11 = arith.constant 0.000000e+00 : f32
    %14 = vector.broadcast %cst_11 : f32 to vector<16x64xf32>
    %15 = arith.maximumf %13, %14 : vector<16x64xf32>
    %16 = arith.addf %15, %7 : vector<16x64xf32>
    %17 = arith.truncf %16 : vector<16x64xf32> to vector<16x64xbf16>
    %c0_12 = arith.constant 0 : index
    %c0_13 = arith.constant 0 : index
    %18 = vector.load %arg6[%c0_12, %c0_13] : memref<64x128xbf16, #tpu.memory_space<vmem>>, vector<64x128xbf16>
    %cst_14 = arith.constant dense<0.000000e+00> : vector<16x128xf32>
    %19 = tpu.matmul %17, %18, %cst_14 {dimension_numbers = #tpu.dot_dimension_numbers<[1], [0], [0], [1], [0, 0, 1, 1], [], []>} : vector<16x64xbf16>, vector<64x128xbf16>, vector<16x128xf32> -> vector<16x128xf32>
    %c0_15 = arith.constant 0 : index
    %c0_16 = arith.constant 0 : index
    %20 = vector.load %arg7[%c0_15, %c0_16] : memref<1x128xf32, #tpu.memory_space<vmem>>, vector<1x128xf32>
    %21 = vector.broadcast %20 : vector<1x128xf32> to vector<16x128xf32>
    %22 = arith.addf %19, %21 : vector<16x128xf32>
    %23 = arith.truncf %22 : vector<16x128xf32> to vector<16x128xbf16>
    %c0_17 = arith.constant 0 : index
    %c0_18 = arith.constant 0 : index
    %24 = vector.load %arg8[%c0_17, %c0_18] : memref<16x128xbf16, #tpu.memory_space<vmem>>, vector<16x128xbf16>
    tpu.vector_store %arg8[%c0_17, %c0_18], %23 {strides = array<i32>} : memref<16x128xbf16, #tpu.memory_space<vmem>>, vector<16x128xbf16>,
    return
  }
  func.func @transform_0(%arg0: i32) -> (i32, i32) {
    %c0_i32 = arith.constant 0 : i32
    %c0_i32_0 = arith.constant 0 : i32
    return %arg0, %c0_i32 : i32, i32
  }
  func.func @transform_1(%arg0: i32) -> (i32, i32) {
    %c0_i32 = arith.constant 0 : i32
    %c0_i32_0 = arith.constant 0 : i32
    %c0_i32_1 = arith.constant 0 : i32
    return %c0_i32, %c0_i32_0 : i32, i32
  }
  func.func @transform_2(%arg0: i32) -> (i32, i32) {
    %c0_i32 = arith.constant 0 : i32
    %c0_i32_0 = arith.constant 0 : i32
    %c0_i32_1 = arith.constant 0 : i32
    return %c0_i32, %c0_i32_0 : i32, i32
  }
  func.func @transform_3(%arg0: i32) -> (i32, i32) {
    %c0_i32 = arith.constant 0 : i32
    %c0_i32_0 = arith.constant 0 : i32
    %c0_i32_1 = arith.constant 0 : i32
    return %c0_i32, %c0_i32_0 : i32, i32
  }
  func.func @transform_4(%arg0: i32) -> (i32, i32) {
    %c0_i32 = arith.constant 0 : i32
    %c0_i32_0 = arith.constant 0 : i32
    %c0_i32_1 = arith.constant 0 : i32
    return %c0_i32, %c0_i32_0 : i32, i32
  }
  func.func @transform_5(%arg0: i32) -> (i32, i32) {
    %c0_i32 = arith.constant 0 : i32
    %c0_i32_0 = arith.constant 0 : i32
    %c0_i32_1 = arith.constant 0 : i32
    return %c0_i32, %c0_i32_0 : i32, i32
  }
  func.func @transform_6(%arg0: i32) -> (i32, i32) {
    %c0_i32 = arith.constant 0 : i32
    %c0_i32_0 = arith.constant 0 : i32
    %c0_i32_1 = arith.constant 0 : i32
    return %c0_i32, %c0_i32_0 : i32, i32
  }
  func.func @transform_7(%arg0: i32) -> (i32, i32) {
    %c0_i32 = arith.constant 0 : i32
    %c0_i32_0 = arith.constant 0 : i32
    return %arg0, %c0_i32 : i32, i32
  }
}

</mosaic_0001>

<bundles_post_ra>
// kernel: tpu_custom_call.1
= control target key start
LH: loop header
LB: loop body
LE: loop exit
PB: predicated region body
PF: predicated region fallthrough
CT: control target
= control target key end

     0   :  { %12 = vsyncpa [#allocation3], 0  ;;  %s1799_s0 = inlined_call_operand.vmem [shape: bf16[48,784], index: 0, kind: input, shape index: {}]   ;;  %s1800_s1 = inlined_call_operand.vmem [shape: bf16[784,64], index: 1, kind: input, shape index: {}]   ;;  %s1801_s2 = inlined_call_operand.vmem [shape: f32[1,64], index: 2, kind: input, shape index: {}]   ;;  %s1802_s3 = inlined_call_operand.vmem [shape: bf16[64,64], index: 3, kind: input, shape index: {}]   ;;  %s1803_s4 = inlined_call_operand.vmem [shape: f32[1,64], index: 4, kind: input, shape index: {}]   ;;  %s1804_s5 = inlined_call_operand.vmem [shape: bf16[64,128], index: 5, kind: input, shape index: {}]   ;;  %s1805_s6 = inlined_call_operand.vmem [shape: f32[1,128], index: 6, kind: input, shape index: {}]   ;;  %s1806_s7 = inlined_call_operand.hbm [shape: bf16[48,128], index: 7, kind: output, shape index: {}]  }
   0x1   :  { %14 = vsyncpa [#allocation3 + $0x1], 0  ;;  %s1514_s24 = smov 0   ;;  %s1516_s25 = smov 0  }
   0x2   :  { %s1518_s26 = smov 0   ;;  %s1520_s27 = smov 0  }
   0x3 LB: > { %s1535_s28 = sadd.s32 4294967295, %s1470_s27   ;;  %s1022_s29 = sadd.s32 4294967294, %s1470_s27   ;;  %s1470_s27 = sphi %s1520_s27, %s1812_s27   ;;  %s1466_s26 = sphi %s1518_s26, %s1811_s26   ;;  %s1462_s25 = sphi %s1516_s25, %s1810_s25   ;;  %s1458_s24 = sphi %s1514_s24, %s1809_s24  }
   0x4   : > { %s1539_s30 = sadd.s32 1, %s1470_s27   ;;  %s179_s8 = sadd.s32 1, %s1466_s26 }
   0x5   : > { %s176_s9 = ssub.s32 %s1470_s27, %s1539_s30  ;;  %p189_p0 = scmp.ne.s32.totalorder %s1466_s26, %s1462_s25 }
   0x6   : > { %p177_p1 = scmp.eq.s32.totalorder %s176_s9, 0  ;;  %p190_p2 = scmp.eq.s32.totalorder %s1535_s28, 2 }
   0x7   : > { %p195_p3 = scmp.ne.s32.totalorder %s1462_s25, %s1458_s24  ;;  %p196_p4 = scmp.eq.s32.totalorder %s1022_s29, 2 }
   0x8   : > { %s1550_s10 = scalar_select %p177_p1, %s1466_s26, %s179_s8  }
   0x9   : > { %p1552_p5 = por %p190_p2, %p189_p0  ;;  %p1556_p6 = por %p196_p4, %p195_p3 }
   0xa   : > { %p1025_p7 = scmp.ge.s32.totalorder %s1470_s27, 1  ;;  %p242_p8 = scmp.lt.s32.totalorder %s1470_s27, 4 }
   0xc   : > { %p243_p9 = pnand %p1025_p7, %p242_p8 }
   0xd   : > { %s1027_s23 = sshll.u32 (!%p243_p9), %s1535_s28, 1  ;;  %s1357_s16 = sshll.u32 (!%p243_p9), %s1535_s28, 3 }
   0xe   : > { %246 = sbr.rel (%p243_p9) target bundleno = 523 (0x20b), region = 48  ;;  %p276_p10 = scmp.lt.s32.totalorder (!%p243_p9), %s1027_s23, 5 }
   0xf   : > { %s956_s19 = scalar_lea.hbm (!%p243_p9), %s1806_s7, %s1357_s16  ;;  %s1428_s16 = scalar_lea.hbm (!%p243_p9), %s1806_s7, 24 }
  0x10   : > { %s959_s8 = sshll.u32 (!%p243_p9), %s956_s19, 4  ;;  %s960_s8 = int_to_ptr.hbm [resolvable:$true] %s959_s8 }
  0x11   : > { %s1422_s9 = sshra.s32 (!%p243_p9), %s960_s8, 4  ;;  %s1423_s9 = int_to_ptr.hbm [resolvable:$true] %s1422_s9 }
  0x12   : > { %s1424_s13 = scalar_lea.hbm (!%p243_p9), %s1423_s9, 8  ;;  %p1429_p0 = scmp.lt.s32.totalorder (!%p243_p9), %s1423_s9, %s1806_s7 }
  0x13   : > { %v1307_v0 = vld [vmem:[%s1800_s1 + $0x38] sm:$0xff]  ;;  %v1306_v4 = vld [vmem:[%s1800_s1 + $0x30] sm:$0xff]  ;;  %v1305_v8 = vld [vmem:[%s1800_s1 + $0x28] sm:$0xff]  ;;  %s1814_s23 = smov (!%p276_p10, %s1027_s23), 5  ;;  %vm723_vm0 = vcmask 130048   ;;  %vm864_vm1 = vcmask 523264   ;;  %p1425_p11 = scmp.ne.s32.totalorder %s1423_s9, %s1424_s13 }
  0x14   : > { %v1315_v1 = vld [vmem:[%s1800_s1 + $0x78] sm:$0xff]  ;;  %727 = vmatpush.bf16.msra.mxu0 %v1307_v0  ;;  %v1314_v5 = vld [vmem:[%s1800_s1 + $0x70] sm:$0xff]  ;;  %v1313_v9 = vld [vmem:[%s1800_s1 + $0x68] sm:$0xff]  ;;  %s1363_s21 = smul.u32 28, %s1814_s23  ;;  %p1430_p1 = scmp.lt.s32.totalorder %s1428_s16, %s1424_s13 }
  0x15   : > { %v1323_v2 = vld [vmem:[%s1800_s1 + $0xb8] sm:$0xff]  ;;  %741 = vmatpush.bf16.msra.mxu1 %v1315_v1  ;;  %v1322_v6 = vld [vmem:[%s1800_s1 + $0xb0] sm:$0xff]  ;;  %v1321_v10 = vld [vmem:[%s1800_s1 + $0xa8] sm:$0xff]  ;;  %p1426_p12 = pnand %p1425_p11, %p1552_p5 }
  0x16   : > { %v1331_v3 = vld [vmem:[%s1800_s1 + $0xf8] sm:$0xff]  ;;  %755 = vmatpush.bf16.msra.mxu2 %v1323_v2  ;;  %v1330_v7 = vld [vmem:[%s1800_s1 + $0xf0] sm:$0xff]  ;;  %v1329_v11 = vld [vmem:[%s1800_s1 + $0xe8] sm:$0xff]  ;;  %s1650_s18 = scalar_lea.vmem %s1799_s0, %s1363_s21  ;;  %p1431_p2 = por %p1430_p1, %p1429_p0 }
  0x17   : > { %769 = vmatpush.bf16.msra.mxu3 %v1331_v3  ;;  %v1304_v12 = vld [vmem:[%s1800_s1 + $0x20] sm:$0xff]  ;;  %v1303_v16 = vld [vmem:[%s1800_s1 + $0x18] sm:$0xff]  ;;  %v1302_v20 = vld [vmem:[%s1800_s1 + $0x10] sm:$0xff]  ;;  %p1427_p13 = pneg %p1426_p12 }
  0x18   : > { %728 = vmatpush.bf16.msra.mxu0 %v1306_v4  ;;  %v1312_v13 = vld [vmem:[%s1800_s1 + $0x60] sm:$0xff]  ;;  %v1311_v17 = vld [vmem:[%s1800_s1 + $0x58] sm:$0xff]  ;;  %v1310_v21 = vld [vmem:[%s1800_s1 + $0x50] sm:$0xff] }
  0x19   : > { %742 = vmatpush.bf16.msra.mxu1 %v1314_v5  ;;  %v1320_v14 = vld [vmem:[%s1800_s1 + $0xa0] sm:$0xff]  ;;  %v1319_v18 = vld [vmem:[%s1800_s1 + $0x98] sm:$0xff]  ;;  %v1318_v22 = vld [vmem:[%s1800_s1 + $0x90] sm:$0xff]  ;;  %p1432_p3 = pnand %p1431_p2, %p1427_p13 }
  0x1a   : > { %756 = vmatpush.bf16.msra.mxu2 %v1322_v6  ;;  %v1328_v15 = vld [vmem:[%s1800_s1 + $0xe0] sm:$0xff]  ;;  %v1327_v19 = vld [vmem:[%s1800_s1 + $0xd8] sm:$0xff]  ;;  %v1326_v23 = vld [vmem:[%s1800_s1 + $0xd0] sm:$0xff] }
  0x1b   : > { %770 = vmatpush.bf16.msra.mxu3 %v1330_v7  ;;  %v1301_v24 = vld [vmem:[%s1800_s1 + $0x8] sm:$0xff]  ;;  %v1300_v28 = vld [vmem:[%s1800_s1] sm:$0xff]  ;;  %v1296_v31 = vld [vmem:[%s1650_s18 + $0x18] sm:$0xf0] }
  0x1c   : > { %729 = vmatpush.bf16.msra.mxu0 %v1305_v8  ;;  %v1309_v25 = vld [vmem:[%s1800_s1 + $0x48] sm:$0xff]  ;;  %v1308_v29 = vld [vmem:[%s1800_s1 + $0x40] sm:$0xff]  ;;  %v1339_v34 = vld [vmem:[%s1800_s1 + $0x138] sm:$0xff] }
  0x1d   : > { %743 = vmatpush.bf16.msra.mxu1 %v1313_v9  ;;  %v1317_v26 = vld [vmem:[%s1800_s1 + $0x88] sm:$0xff]  ;;  %v1031_v30 = vld [vmem:[%s1650_s18] sm:$0xf]  ;;  %v1293_v32 = vld [vmem:[%s1650_s18 + $0x4] sm:$0xf] }
  0x1e   : > { %757 = vmatpush.bf16.msra.mxu2 %v1321_v10  ;;  %v1325_v27 = vld [vmem:[%s1800_s1 + $0xc8] sm:$0xff]  ;;  %v1033_v33 = vld [vmem:[%s1650_s18 + $0x1c] sm:$0xf0]  ;;  %v1347_v35 = vld [vmem:[%s1800_s1 + $0x178] sm:$0xff]  ;;  %v1032_v40 = vor.u32 %v1296_v31, %v1031_v30 }
  0x1f   : > { %771 = vmatpush.bf16.msra.mxu3 %v1329_v11  ;;  %v1316_v36 = vld [vmem:[%s1800_s1 + $0x80] sm:$0xff]  ;;  %v1039_v38 = vld [vmem:[%s1650_s18 + $0x8] sm:$0xf]  ;;  %v1294_v41 = vld [vmem:[%s1650_s18 + $0xc] sm:$0xf]  ;;  %v1036_v43 = vor.u32 %v1293_v32, %v1033_v33 }
  0x20   : > { %730 = vmatpush.bf16.msra.mxu0 %v1304_v12  ;;  %v1324_v37 = vld [vmem:[%s1800_s1 + $0xc0] sm:$0xff]  ;;  %v1041_v42 = vld [vmem:[%s1650_s18 + $0x24] sm:$0xf0]  ;;  %v1338_v45 = vld [vmem:[%s1800_s1 + $0x130] sm:$0xff] }
  0x21   : > { %744 = vmatpush.bf16.msra.mxu1 %v1312_v13  ;;  %v1297_v39 = vld [vmem:[%s1650_s18 + $0x20] sm:$0xf0]  ;;  %v1346_v46 = vld [vmem:[%s1800_s1 + $0x170] sm:$0xff]  ;;  %v1044_v48 = vor.u32 %v1294_v41, %v1041_v42  ;;  %v1337_v49 = vld [vmem:[%s1800_s1 + $0x128] sm:$0xff] }
  0x22   : > { %758 = vmatpush.bf16.msra.mxu2 %v1320_v14  ;;  %v1348_v44 = vld [vmem:[%s1800_s1 + $0x180] sm:$0xff]  ;;  %v1040_v47 = vor.u32 %v1297_v39, %v1039_v38  ;;  %v1345_v50 = vld [vmem:[%s1800_s1 + $0x168] sm:$0xff]  ;;  %v1335_v53 = vld [vmem:[%s1800_s1 + $0x118] sm:$0xff] }
  0x23   : > { %772 = vmatpush.bf16.msra.mxu3 %v1328_v15  ;;  %v1336_v51 = vld [vmem:[%s1800_s1 + $0x120] sm:$0xff]  ;;  %v1343_v54 = vld [vmem:[%s1800_s1 + $0x158] sm:$0xff]  ;;  %v1299_v56 = vld [vmem:[%s1650_s18 + $0x30] sm:$0xf0] }
  0x24   : > { %731 = vmatpush.bf16.msra.mxu0 %v1303_v16  ;;  %v1344_v52 = vld [vmem:[%s1800_s1 + $0x160] sm:$0xff]  ;;  %v1055_v55 = vld [vmem:[%s1650_s18 + $0x18] sm:$0xf]  ;;  %v1334_v57 = vld [vmem:[%s1800_s1 + $0x110] sm:$0xff] }
  0x25   : > { %745 = vmatpush.bf16.msra.mxu1 %v1311_v17  ;;  %v1342_v58 = vld [vmem:[%s1800_s1 + $0x150] sm:$0xff]  ;;  %v1056_v59 = vor.u32 %v1299_v56, %v1055_v55  ;;  %v1333_v60 = vld [vmem:[%s1800_s1 + $0x108] sm:$0xff]  ;;  %v1332_v62 = vld [vmem:[%s1800_s1 + $0x100] sm:$0xff] }
  0x26   : > { %759 = vmatpush.bf16.msra.mxu2 %v1319_v18  ;;  %v1341_v61 = vld [vmem:[%s1800_s1 + $0x148] sm:$0xff]  ;;  %v1340_v63 = vld [vmem:[%s1800_s1 + $0x140] sm:$0xff]  ;;  %v1047_v0 = vld [vmem:[%s1650_s18 + $0x10] sm:$0xf] }
  0x27   : > { %773 = vmatpush.bf16.msra.mxu3 %v1327_v19  ;;  %v1298_v1 = vld [vmem:[%s1650_s18 + $0x28] sm:$0xf0]  ;;  %v1295_v2 = vld [vmem:[%s1650_s18 + $0x14] sm:$0xf]  ;;  %v1049_v3 = vld [vmem:[%s1650_s18 + $0x2c] sm:$0xf0] }
  0x28   : > { %732 = vmatpush.bf16.msra.mxu0 %v1302_v20  ;;  %v1048_v4 = vor.u32 %v1298_v1, %v1047_v0  ;;  %v1052_v5 = vor.u32 %v1295_v2, %v1049_v3  ;;  %v1352_v6 = vld [vmem:[%s1802_s3 + $0x18] sm:$0xff]  ;;  %v1351_v7 = vld [vmem:[%s1802_s3 + $0x10] sm:$0xff]  ;;  %v1350_v8 = vld [vmem:[%s1802_s3 + $0x8] sm:$0xff]  ;;  %s272_s18 = sand.u32 1, %s1462_s25  }
  0x29   : > { %746 = vmatpush.bf16.msra.mxu1 %v1310_v21  ;;  %v1349_v12 = vld [vmem:[%s1802_s3] sm:$0xff]  ;;  %v1356_v42 = vld [vmem:[%s1804_s5 + $0x18] sm:$0xff]  ;;  %s1026_s15 = sshll.u32 %s272_s18, 3  ;;  %s945_s28 = scalar_lea.sflag [#allocation3], %s272_s18 }
  0x2a   : > { %760 = vmatpush.bf16.msra.mxu2 %v1318_v22  ;;  %v1405_v13 = vld [vmem:[%s1801_s2] ss:$0 sm:$0xff]  ;;  %s274_s29 = scalar_lea.vmem [#allocation2], %s1026_s15 }
  0x2b   : > { %774 = vmatpush.bf16.msra.mxu3 %v1326_v23  ;;  %s1769_s21 = sshll.u32 %s274_s29, 4  ;;  %s958_s21 = int_to_ptr.vmem [resolvable:$true] %s1769_s21 }
  0x2c   : > { %733 = vmatpush.bf16.msra.mxu0 %v1301_v24 }
  0x2d   : > { %747 = vmatpush.bf16.msra.mxu1 %v1309_v25 }
  0x2e   : > { %761 = vmatpush.bf16.msra.mxu2 %v1317_v26 }
  0x2f   : > { %775 = vmatpush.bf16.msra.mxu3 %v1325_v27 }
  0x30   : > { %734 = vmatpush.bf16.msra.mxu0 %v1300_v28 }
  0x31   : > { %748 = vmatpush.bf16.msra.mxu1 %v1308_v29 }
  0x32   : > { %762 = vmatpush.bf16.msra.mxu2 %v1316_v36 }
  0x33   : > { %776 = vmatpush.bf16.msra.mxu3 %v1324_v37  ;;  %735 = vmatmul.bf16.vlgmr.msra.gmra.mxu0 %v1032_v40 }
  0x34   : > { %783 = vmatpush.bf16.msrb.mxu0 %v1339_v34  ;;  %749 = vmatmul.bf16.vlgmr.msra.gmra.mxu1 %v1036_v43  ;;  %v1355_v43 = vld [vmem:[%s1804_s5 + $0x10] sm:$0xff] }
  0x35   : > { %797 = vmatpush.bf16.msrb.mxu1 %v1347_v35  ;;  %763 = vmatmul.bf16.vlgmr.msra.gmra.mxu2 %v1040_v47  ;;  %v1406_v47 = vld [vmem:[%s1803_s4] ss:$0 sm:$0xff] }
  0x36   : > { %818 = vmatpush.bf16.msrb.mxu2 %v1348_v44  ;;  %777 = vmatmul.bf16.vlgmr.msra.gmra.mxu3 %v1044_v48  ;;  %v1354_v44 = vld [vmem:[%s1804_s5 + $0x8] sm:$0xff] }
  0x37   : > { %872 = vmatpush.bf16.msrb.mxu3 %v1352_v6 }
  0x38   : > { %784 = vmatpush.bf16.msrb.mxu0 %v1338_v45  ;;  %v1353_v45 = vld [vmem:[%s1804_s5] sm:$0xff] }
  0x39   : > { %798 = vmatpush.bf16.msrb.mxu1 %v1346_v46 }
  0x3a   : > { %930 = vmatpush.bf16.msra.mxu2 %v1356_v42 }
  0x3b   : > { %873 = vmatpush.bf16.msrb.mxu3 %v1351_v7 }
  0x3c   : > { %785 = vmatpush.bf16.msrb.mxu0 %v1337_v49 }
  0x3d   : > { %799 = vmatpush.bf16.msrb.mxu1 %v1345_v50 }
  0x3e   : > { %931 = vmatpush.bf16.msra.mxu2 %v1355_v43 }
  0x3f   : > { %874 = vmatpush.bf16.msrb.mxu3 %v1350_v8 }
  0x40   : > { %786 = vmatpush.bf16.msrb.mxu0 %v1336_v51 }
  0x41   : > { %800 = vmatpush.bf16.msrb.mxu1 %v1344_v52 }
  0x42   : > { %932 = vmatpush.bf16.msra.mxu2 %v1354_v44 }
  0x43   : > { %875 = vmatpush.bf16.msrb.mxu3 %v1349_v12 }
  0x44   : > { %787 = vmatpush.bf16.msrb.mxu0 %v1335_v53 }
  0x45   : > { %801 = vmatpush.bf16.msrb.mxu1 %v1343_v54  ;;  %1253 = vmatmul.msk.bf16.vlgmr.msrb.gmra.mxu2 %vm723_vm0, %v1056_v59 }
  0x46   : > { %933 = vmatpush.bf16.msra.mxu2 %v1353_v45 }
  0x48   : > { %788 = vmatpush.bf16.msrb.mxu0 %v1334_v57  ;;  %v1407_v57 = vld [vmem:[%s1805_s6] ss:$0 sm:$0xff] }
  0x49   : > { %802 = vmatpush.bf16.msrb.mxu1 %v1342_v58 }
  0x4c   : > { %789 = vmatpush.bf16.msrb.mxu0 %v1333_v60 }
  0x4d   : > { %803 = vmatpush.bf16.msrb.mxu1 %v1341_v61 }
  0x50   : > { %790 = vmatpush.bf16.msrb.mxu0 %v1332_v62 }
  0x51   : > { %804 = vmatpush.bf16.msrb.mxu1 %v1340_v63 }
  0x53   : > { %791 = vmatmul.bf16.vlgmr.msrb.gmra.mxu0 %v1048_v4 }
  0x54   : > { %805 = vmatmul.bf16.vlgmr.msrb.gmra.mxu1 %v1052_v5 }
  0xb0   : > { %v736_v9 = vpop.f32.mrf.mxu0 }
  0xb1   : > { %v750_v10 = vpop.f32.mrf.mxu1  ;;  %v737_v14 = vadd.f32 %v1405_v13, %v736_v9 }
  0xb3   : > { %v751_v18 = vadd.f32 %v750_v10, %v737_v14 }
  0xb8   : > { %v764_v11 = vpop.f32.mrf.mxu2  ;;  %v738_v15 = vpop.f32.mrf.mxu0 }
  0xb9   : > { %v752_v16 = vpop.f32.mrf.mxu1  ;;  %v778_v19 = vpop.f32.mrf.mxu3  ;;  %v739_v20 = vadd.f32 %v1405_v13, %v738_v15  ;;  %v765_v21 = vadd.f32 %v764_v11, %v751_v18 }
  0xbb   : > { %v753_v22 = vadd.f32 %v752_v16, %v739_v20  ;;  %v779_v25 = vadd.f32 %v778_v19, %v765_v21 }
  0xc0   : > { %v766_v17 = vpop.f32.mrf.mxu2 }
  0xc1   : > { %v767_v27 = vadd.f32 %v766_v17, %v753_v22  ;;  %v780_v29 = vpop.f32.mrf.mxu3 }
  0xc3   : > { %v781_v30 = vadd.f32 %v780_v29, %v767_v27 }
  0xc8   : > { %v820_v26 = vpop.f32.mrf.mxu2 }
  0xd0   : > { %v792_v23 = vpop.f32.mrf.mxu0  ;;  %v822_v37 = vpop.f32.mrf.mxu2 }
  0xd1   : > { %v806_v24 = vpop.f32.mrf.mxu1  ;;  %v793_v28 = vadd.f32 %v792_v23, %v779_v25 }
  0xd3   : > { %v807_v31 = vadd.f32 %v806_v24, %v793_v28 }
  0xd5   : > { %v821_v35 = vadd.f32 %v820_v26, %v807_v31 }
  0xd7   : > { %v825_v39 = vmax.f32 %v821_v35, 0.0 }
  0xd8   : > { %v794_v32 = vpop.f32.mrf.mxu0 }
  0xd9   : > { %v795_v33 = vadd.f32 %v794_v32, %v781_v30  ;;  %v808_v34 = vpop.f32.mrf.mxu1 }
  0xdb   : > { %v809_v36 = vadd.f32 %v808_v34, %v795_v33 }
  0xdd   : > { %v823_v38 = vadd.f32 %v822_v37, %v809_v36 }
  0xdf   : > { %v826_v40 = vmax.f32 %v823_v38, 0.0 }
  0xe1   : > { %v827_v41 = vpack.c.bf16 %v826_v40, %v825_v39 }
  0xe3   : > { %1270 = vmatmul.msk.bf16.vlgmr.msrb.gmra.mxu3 %vm864_vm1, %v827_v41 }
 0x166   : > { %v877_v46 = vpop.f32.mrf.mxu3 }
 0x167   : > { %v878_v48 = vadd.f32 %v1406_v47, %v877_v46 }
 0x169   : > { %v882_v50 = vmax.f32 %v878_v48, 0.0 }
 0x16b   : > { %v884_v53 = vadd.f32 %v882_v50, %v825_v39 }
 0x16e   : > { %v879_v49 = vpop.f32.mrf.mxu3 }
 0x16f   : > { %v880_v51 = vadd.f32 %v1406_v47, %v879_v49 }
 0x171   : > { %v883_v52 = vmax.f32 %v880_v51, 0.0 }
 0x173   : > { %v885_v54 = vadd.f32 %v883_v52, %v826_v40 }
 0x175   : > { %v886_v55 = vpack.c.bf16 %v885_v54, %v884_v53 }
 0x177   : > { %1287 = vmatmul.msk.bf16.vlgmr.msra.gmra.mxu2 %vm864_vm1, %v886_v55 }
 0x1fa   : > { %v935_v56 = vpop.f32.mrf.mxu2 }
 0x1fb   : > { %v936_v59 = vadd.f32 %v1407_v57, %v935_v56 }
 0x202   : > { %v937_v58 = vpop.f32.mrf.mxu2 }
 0x203   : > { %v938_v60 = vadd.f32 %v1407_v57, %v937_v58 }
 0x205   : > { %v1361_v61 = vpack.c.bf16 %v938_v60, %v936_v59 }
 0x207   : > { %1362 = vst [vmem:[%s274_s29] sm:$0xff] %v1361_v61  }
 0x208   : > { %1435 = shalt.err (!%p1432_p3)
}
 0x209   : > { %s1472_s18 = smov 64   ;;  %s1473_s19 = smov 4  }
 0x20a   : > { %1364 = dma.vmem_to_hbm [thread:$0]  (%p1552_p5), %s958_s21, 128, %s960_s8, %s945_s28, %s1472_s18, %s1472_s18, %s1473_s19  }
 0x20b PF: > { %p1370_p4 = scmp.ge.s32.totalorder %s1470_s27, 2  ;;  %s974_s20 = sand.u32 1, %s1458_s24  }
 0x20c   : > { %s975_s22 = scalar_lea.sflag [#allocation3], %s974_s20 }
 0x20d   : > { %p1367_p7 = pnand %p1370_p4, %p1556_p6 }
 0x20f   : > { %p1368_p8 = pneg %p1367_p7 }
 0x211   : > { %1453 = dma.done.wait (%p1368_p8), %s975_s22, 128  }
 0x212   : > { %1455 = vsyncadd (%p1368_p8), %s975_s22, 4294967168  ;;  %p17_p9 = scmp.ge.s32.totalorder %s1539_s30, 5   ;;  %s1809_s24 = smov %s1462_s25 }
 0x213   : > { %s1810_s25 = smov %s1466_s26  ;;  %s1811_s26 = smov %s1550_s10 }
 0x214   : > { %s1812_s27 = smov %s1539_s30  ;;  %19 = sbr.rel (!%p17_p9) target bundleno = 3 (0x3), region = 83 }
 0x219   :  { %981 = vsyncpa [#allocation3], 1 }
 0x21a   :  { %983 = vsyncpa [#allocation3 + $0x1], 1 }

</bundles_post_ra>
